<compile_context>
chip_gen: v5e
topology: v5e:2x2
jax: 0.10.0
libtpu: 0.0.40
codegen_flags: <defaults>
</compile_context>

<pallas_src>
import jax
import jax.numpy as jnp
from jax import lax
from jax.experimental import pallas as pl
from jax.experimental.pallas import tpu as pltpu


def _irene_kernel(x_ref, mask_ref,
                  wf_ref, bf_ref,
                  w1_ref, b1_ref, w2_ref, b2_ref,
                  out_ref, z_ref):
    M, Din = x_ref.shape                 # M = block_b * N (flattened batch block)
    E = wf_ref.shape[1] // 4
    BB = out_ref.shape[0]                # block_b
    N = M // BB

    # --- fused [h | q | k | v] projection: one (M, Din) @ (Din, 4E) MXU pass ---
    hqkv = jnp.dot(x_ref[...], wf_ref[...],
                   preferred_element_type=jnp.float32) + bf_ref[...]
    h = hqkv[:, :E]
    q = hqkv[:, E:2 * E]
    k = hqkv[:, 2 * E:3 * E]
    v = hqkv[:, 3 * E:]

    # --- block-diagonal flat attention over the whole batch block ---
    scale = 1.0 / jnp.sqrt(jnp.float32(E))
    scores = lax.dot_general(
        q.astype(jnp.bfloat16), k.astype(jnp.bfloat16),
        (((1,), (1,)), ((), ())),                       # q @ k^T  ->  (M, M)
        preferred_element_type=jnp.float32) * scale
    scores = scores + mask_ref[...]                     # additive mask (f32)

    m = jnp.max(scores, axis=-1, keepdims=True)
    e = jnp.exp(scores - m)
    p = e * pl.reciprocal(jnp.sum(e, axis=-1, keepdims=True), approx=True)

    z = jnp.dot(p.astype(jnp.bfloat16), v.astype(jnp.bfloat16),
                preferred_element_type=jnp.float32) + h          # residual
    z_ref[...] = z.astype(z_ref.dtype)   # natural (M, E) layout, no relayout

    # --- classification head: node-mean pool -> Linear -> ReLU -> Linear ---
    pooled = jnp.mean(z.reshape(BB, N, E), axis=1)               # (BB, E)
    h1 = jnp.dot(pooled.astype(jnp.bfloat16), w1_ref[...],
                 preferred_element_type=jnp.float32) + b1_ref[...]
    h1 = jnp.maximum(h1, 0.0)
    out = jnp.dot(h1.astype(jnp.bfloat16), w2_ref[...],
                  preferred_element_type=jnp.float32) + b2_ref[...]
    out_ref[...] = out.astype(out_ref.dtype)                     # (BB, Cp)


def irene_forward(x, adj, params, *, block_b=None):
    """x: (B, N, Din) f32, adj: (B, N, N).  Returns (logits (B, C), z (B, N, E))."""
    B, N, Din = x.shape
    E = params["w_in"].shape[1]
    H = params["w1"].shape[1]
    C = params["w2"].shape[1]

    # --- fuse W_in into the QKV projection (trace-time, tiny) ---
    wqkv = jnp.concatenate([params["w_q"], params["w_k"], params["w_v"]], axis=1)
    bqkv = jnp.concatenate([params["b_q"], params["b_k"], params["b_v"]], axis=1)
    w_fused = jnp.concatenate([params["w_in"], params["w_in"] @ wqkv], axis=1)       # (Din, 4E)
    b_fused = jnp.concatenate([params["b_in"], params["b_in"] @ wqkv + bqkv], axis=1)  # (1, 4E)

    # --- pad class dim to a lane-dense multiple of 128 (sliced back after) ---
    Cp = pl.cdiv(C, 128) * 128
    w2p = jnp.zeros((H, Cp), jnp.float32).at[:, :C].set(params["w2"])
    b2p = jnp.zeros((1, Cp), jnp.float32).at[:, :C].set(params["b2"])

    # --- batch blocking: aim for block_b*N >= 128 (full MXU M dim) ---
    if block_b is None:
        block_b = min(B, max(1, -(-128 // N)))
    block_b = max(1, min(block_b, B))
    if block_b < B and block_b % 8 != 0:
        # multi-step grid: the logits block's leading dim must be 8-aligned
        block_b = min(B, -(-block_b // 8) * 8)
    B_pad = pl.cdiv(B, block_b) * block_b
    G = B_pad // block_b
    M = block_b * N

    if B_pad != B:
        x = jnp.pad(x, ((0, B_pad - B), (0, 0), (0, 0)))
        adj = jnp.pad(adj, ((0, B_pad - B), (0, 0), (0, 0)))

    # --- precompute block-diagonal additive mask per grid step ---
    # 0 where same-graph edge, -1e9 where same-graph non-edge, -2e9 cross-graph
    edge = (adj > 0).reshape(G, block_b, N, N).astype(jnp.float32)
    eye_b = jnp.eye(block_b, dtype=jnp.float32)
    edge_bd = jnp.einsum('gbij,bc->gbicj', edge, eye_b)          # (G, bb, N, bb, N)
    same_bd = eye_b[None, :, None, :, None]
    mask_bd = jnp.where(edge_bd > 0, 0.0,
                        jnp.where(same_bd > 0, -1e9, -2e9)).astype(jnp.float32)
    mask_flat = mask_bd.reshape(G * M, M)

    # --- bf16 matmul operands (f32 accumulation in-kernel) ---
    x_flat = x.reshape(B_pad * N, Din).astype(jnp.bfloat16)
    wf_b = w_fused.astype(jnp.bfloat16)
    w1_b = params["w1"].astype(jnp.bfloat16)
    w2_b = w2p.astype(jnp.bfloat16)

    wspec = lambda shp: pl.BlockSpec(shp, lambda b: (0, 0))

    grid_spec = pltpu.PrefetchScalarGridSpec(
        num_scalar_prefetch=0,
        grid=(G,),
        in_specs=[
            pl.BlockSpec((M, Din), lambda b: (b, 0)),            # x block (flat)
            pl.BlockSpec((M, M), lambda b: (b, 0)),              # additive mask
            wspec((Din, 4 * E)), wspec((1, 4 * E)),              # fused W, b
            wspec((E, H)), wspec((1, H)),                        # mlp W1, b1
            wspec((H, Cp)), wspec((1, Cp)),                      # mlp W2, b2 (padded)
        ],
        out_specs=[
            pl.BlockSpec((block_b, Cp), lambda b: (b, 0)),       # logits (lane-dense)
            pl.BlockSpec((M, E), lambda b: (b, 0)),              # z (natural layout)
        ],
    )

    out_shape = (
        jax.ShapeDtypeStruct((B_pad, Cp), jnp.float32),
        jax.ShapeDtypeStruct((B_pad * N, E), jnp.float32),
    )

    flops = 2 * (B_pad * N * Din * 4 * E                # fused projection
                 + G * M * M * E * 2                    # scores + P@V
                 + B_pad * E * H + B_pad * H * Cp)      # MLP head
    bytes_accessed = (x_flat.size * 2 + mask_flat.size * 4
                      + B_pad * N * E * 4 + B_pad * Cp * 4
                      + (Din * 4 * E + E * H + H * Cp) * 2
                      + (4 * E + H + Cp) * 4)
    cost = pl.CostEstimate(flops=int(flops),
                           transcendentals=int(G * M * M),
                           bytes_accessed=int(bytes_accessed))

    fn = pl.pallas_call(
        _irene_kernel,
        out_shape=out_shape,
        grid_spec=grid_spec,
        compiler_params=pltpu.CompilerParams(
            dimension_semantics=("parallel",)),
        cost_estimate=cost,
    )
    logits_pad, z_flat = fn(x_flat, mask_flat,
                            wf_b, b_fused,
                            w1_b, params["b1"],
                            w2_b, b2p)
    logits = logits_pad[:B, :C]
    z = z_flat[:B * N].reshape(B, N, E)
    return logits, z


def init_params(key, input_dim, embed_dim, hidden, num_classes):
    ks = jax.random.split(key, 6)

    def lin(k, fan_in, fan_out):
        scale = 1.0 / jnp.sqrt(jnp.float32(fan_in))
        return (jax.random.uniform(k, (fan_in, fan_out), jnp.float32,
                                   minval=-scale, maxval=scale),
                jnp.zeros((1, fan_out), jnp.float32))

    w_in, b_in = lin(ks[0], input_dim, embed_dim)
    w_q, b_q = lin(ks[1], embed_dim, embed_dim)
    w_k, b_k = lin(ks[2], embed_dim, embed_dim)
    w_v, b_v = lin(ks[3], embed_dim, embed_dim)
    w1, b1 = lin(ks[4], embed_dim, hidden)
    w2, b2 = lin(ks[5], hidden, num_classes)
    return dict(w_in=w_in, b_in=b_in, w_q=w_q, b_q=b_q, w_k=w_k, b_k=b_k,
                w_v=w_v, b_v=b_v, w1=w1, b1=b1, w2=w2, b2=b2)


if __name__ == "__main__":
    # 16 graphs, 8 nodes, 16 input feats, 32-dim embedding,
    # 128 hidden (nn.Linear(embed_dim, 128) in the module), 4 classes.
    B, N, Din, E, H, C = 16, 8, 16, 32, 128, 4

    key = jax.random.PRNGKey(0)
    kx, kadj, kp = jax.random.split(key, 3)

    x = jax.random.normal(kx, (B, N, Din), jnp.float32)
    # symmetric binary adjacency with self-loops
    a = (jax.random.uniform(kadj, (B, N, N)) > 0.5).astype(jnp.float32)
    adj = jnp.clip(a + jnp.transpose(a, (0, 2, 1)) + jnp.eye(N)[None], 0.0, 1.0)

    params = init_params(kp, Din, E, H, C)

    logits, z = irene_forward(x, adj, params)   # block_b auto -> 16 (single grid step)
    jax.block_until_ready((logits, z))

    assert logits.shape == (B, C) and z.shape == (B, N, E)
    assert bool(jnp.all(jnp.isfinite(logits))) and bool(jnp.all(jnp.isfinite(z)))
    print("KERNEL_OK")
</pallas_src>

<mosaic_0001>
module attributes {stable_mosaic.version = 11 : i64} {
  func.func @_irene_kernel(%arg0: i32, %arg1: memref<128x16xbf16, #tpu.memory_space<vmem>>, %arg2: memref<128x128xf32, #tpu.memory_space<vmem>>, %arg3: memref<16x128xbf16, #tpu.memory_space<vmem>>, %arg4: memref<1x128xf32, #tpu.memory_space<vmem>>, %arg5: memref<32x128xbf16, #tpu.memory_space<vmem>>, %arg6: memref<1x128xf32, #tpu.memory_space<vmem>>, %arg7: memref<128x128xbf16, #tpu.memory_space<vmem>>, %arg8: memref<1x128xf32, #tpu.memory_space<vmem>>, %arg9: memref<16x128xf32, #tpu.memory_space<vmem>>, %arg10: memref<128x32xf32, #tpu.memory_space<vmem>>) attributes {dimension_semantics = [#tpu.dimension_semantics<parallel>], iteration_bounds = array<i64: 1>, scalar_prefetch = 0 : i64, scratch_operands = 0 : i64, tpu.core_type = #tpu.core_type<tc>, window_params = [{transform_indices = @transform_0, window_bounds = array<i64: 128, 16>}, {transform_indices = @transform_1, window_bounds = array<i64: 128, 128>}, {pipeline_mode = #tpu.pipeline_mode<synchronous>, transform_indices = @transform_2, window_bounds = array<i64: 16, 128>}, {pipeline_mode = #tpu.pipeline_mode<synchronous>, transform_indices = @transform_3, window_bounds = array<i64: 1, 128>}, {pipeline_mode = #tpu.pipeline_mode<synchronous>, transform_indices = @transform_4, window_bounds = array<i64: 32, 128>}, {pipeline_mode = #tpu.pipeline_mode<synchronous>, transform_indices = @transform_5, window_bounds = array<i64: 1, 128>}, {pipeline_mode = #tpu.pipeline_mode<synchronous>, transform_indices = @transform_6, window_bounds = array<i64: 128, 128>}, {pipeline_mode = #tpu.pipeline_mode<synchronous>, transform_indices = @transform_7, window_bounds = array<i64: 1, 128>}, {transform_indices = @transform_8, window_bounds = array<i64: 16, 128>}, {transform_indices = @transform_9, window_bounds = array<i64: 128, 32>}]} {
    %c0 = arith.constant 0 : index
    %c0_0 = arith.constant 0 : index
    %0 = vector.load %arg1[%c0, %c0_0] : memref<128x16xbf16, #tpu.memory_space<vmem>>, vector<128x16xbf16>
    %c0_1 = arith.constant 0 : index
    %c0_2 = arith.constant 0 : index
    %1 = vector.load %arg3[%c0_1, %c0_2] : memref<16x128xbf16, #tpu.memory_space<vmem>>, vector<16x128xbf16>
    %cst = arith.constant dense<0.000000e+00> : vector<128x128xf32>
    %2 = tpu.matmul %0, %1, %cst {dimension_numbers = #tpu.dot_dimension_numbers<[1], [0], [0], [1], [0, 0, 1, 1], [], []>} : vector<128x16xbf16>, vector<16x128xbf16>, vector<128x128xf32> -> vector<128x128xf32>
    %c0_3 = arith.constant 0 : index
    %c0_4 = arith.constant 0 : index
    %3 = vector.load %arg4[%c0_3, %c0_4] : memref<1x128xf32, #tpu.memory_space<vmem>>, vector<1x128xf32>
    %4 = vector.broadcast %3 : vector<1x128xf32> to vector<128x128xf32>
    %5 = arith.addf %2, %4 : vector<128x128xf32>
    %6 = vector.extract_strided_slice %5 {offsets = [0, 0], sizes = [128, 32], strides = [1, 1]} : vector<128x128xf32> to vector<128x32xf32>
    %7 = vector.extract_strided_slice %5 {offsets = [0, 32], sizes = [128, 32], strides = [1, 1]} : vector<128x128xf32> to vector<128x32xf32>
    %8 = vector.extract_strided_slice %5 {offsets = [0, 64], sizes = [128, 32], strides = [1, 1]} : vector<128x128xf32> to vector<128x32xf32>
    %9 = vector.extract_strided_slice %5 {offsets = [0, 96], sizes = [128, 32], strides = [1, 1]} : vector<128x128xf32> to vector<128x32xf32>
    %cst_5 = arith.constant 3.200000e+01 : f32
    %10 = math.sqrt %cst_5 : f32
    %cst_6 = arith.constant 1.000000e+00 : f32
    %11 = arith.divf %cst_6, %10 : f32
    %12 = arith.truncf %7 : vector<128x32xf32> to vector<128x32xbf16>
    %13 = arith.truncf %8 : vector<128x32xf32> to vector<128x32xbf16>
    %cst_7 = arith.constant dense<0.000000e+00> : vector<128x128xf32>
    %14 = tpu.matmul %12, %13, %cst_7 {dimension_numbers = #tpu.dot_dimension_numbers<[1], [1], [0], [0], [0, 0, 1, 0], [], []>} : vector<128x32xbf16>, vector<128x32xbf16>, vector<128x128xf32> -> vector<128x128xf32>
    %15 = vector.broadcast %11 : f32 to vector<128x128xf32>
    %16 = arith.mulf %14, %15 : vector<128x128xf32>
    %c0_8 = arith.constant 0 : index
    %c0_9 = arith.constant 0 : index
    %17 = vector.load %arg2[%c0_8, %c0_9] : memref<128x128xf32, #tpu.memory_space<vmem>>, vector<128x128xf32>
    %18 = arith.addf %16, %17 : vector<128x128xf32>
    %cst_10 = arith.constant dense<0xFF800000> : vector<128xf32>
    %19 = vector.multi_reduction <maximumf>, %18, %cst_10 [1] : vector<128x128xf32> to vector<128xf32>
    %20 = vector.shape_cast %19 : vector<128xf32> to vector<128x1xf32>
    %21 = vector.broadcast %20 : vector<128x1xf32> to vector<128x128xf32>
    %22 = arith.subf %18, %21 : vector<128x128xf32>
    %23 = math.exp %22 : vector<128x128xf32>
    %cst_11 = arith.constant dense<0.000000e+00> : vector<128xf32>
    %24 = vector.multi_reduction <add>, %23, %cst_11 [1] : vector<128x128xf32> to vector<128xf32>
    %25 = vector.shape_cast %24 : vector<128xf32> to vector<128x1xf32>
    %26 = tpu.reciprocal %25 {approx = true} : vector<128x1xf32> -> vector<128x1xf32>
    %27 = vector.broadcast %26 : vector<128x1xf32> to vector<128x128xf32>
    %28 = arith.mulf %23, %27 : vector<128x128xf32>
    %29 = arith.truncf %28 : vector<128x128xf32> to vector<128x128xbf16>
    %30 = arith.truncf %9 : vector<128x32xf32> to vector<128x32xbf16>
    %cst_12 = arith.constant dense<0.000000e+00> : vector<128x32xf32>
    %31 = tpu.matmul %29, %30, %cst_12 {dimension_numbers = #tpu.dot_dimension_numbers<[1], [0], [0], [1], [0, 0, 1, 1], [], []>} : vector<128x128xbf16>, vector<128x32xbf16>, vector<128x32xf32> -> vector<128x32xf32>
    %32 = arith.addf %31, %6 : vector<128x32xf32>
    %c0_13 = arith.constant 0 : index
    %c0_14 = arith.constant 0 : index
    %33 = vector.load %arg10[%c0_13, %c0_14] : memref<128x32xf32, #tpu.memory_space<vmem>>, vector<128x32xf32>
    tpu.vector_store %arg10[%c0_13, %c0_14], %32 {strides = array<i32>} : memref<128x32xf32, #tpu.memory_space<vmem>>, vector<128x32xf32>,
    %34 = vector.shape_cast %32 : vector<128x32xf32> to vector<16x8x32xf32>
    %cst_15 = arith.constant dense<0.000000e+00> : vector<16x32xf32>
    %35 = vector.multi_reduction <add>, %34, %cst_15 [1] : vector<16x8x32xf32> to vector<16x32xf32>
    %cst_16 = arith.constant 8.000000e+00 : f32
    %36 = vector.broadcast %cst_16 : f32 to vector<16x32xf32>
    %37 = arith.divf %35, %36 : vector<16x32xf32>
    %38 = arith.truncf %37 : vector<16x32xf32> to vector<16x32xbf16>
    %c0_17 = arith.constant 0 : index
    %c0_18 = arith.constant 0 : index
    %39 = vector.load %arg5[%c0_17, %c0_18] : memref<32x128xbf16, #tpu.memory_space<vmem>>, vector<32x128xbf16>
    %cst_19 = arith.constant dense<0.000000e+00> : vector<16x128xf32>
    %40 = tpu.matmul %38, %39, %cst_19 {dimension_numbers = #tpu.dot_dimension_numbers<[1], [0], [0], [1], [0, 0, 1, 1], [], []>} : vector<16x32xbf16>, vector<32x128xbf16>, vector<16x128xf32> -> vector<16x128xf32>
    %c0_20 = arith.constant 0 : index
    %c0_21 = arith.constant 0 : index
    %41 = vector.load %arg6[%c0_20, %c0_21] : memref<1x128xf32, #tpu.memory_space<vmem>>, vector<1x128xf32>
    %42 = vector.broadcast %41 : vector<1x128xf32> to vector<16x128xf32>
    %43 = arith.addf %40, %42 : vector<16x128xf32>
    %cst_22 = arith.constant 0.000000e+00 : f32
    %44 = vector.broadcast %cst_22 : f32 to vector<16x128xf32>
    %45 = arith.maximumf %43, %44 : vector<16x128xf32>
    %46 = arith.truncf %45 : vector<16x128xf32> to vector<16x128xbf16>
    %c0_23 = arith.constant 0 : index
    %c0_24 = arith.constant 0 : index
    %47 = vector.load %arg7[%c0_23, %c0_24] : memref<128x128xbf16, #tpu.memory_space<vmem>>, vector<128x128xbf16>
    %cst_25 = arith.constant dense<0.000000e+00> : vector<16x128xf32>
    %48 = tpu.matmul %46, %47, %cst_25 {dimension_numbers = #tpu.dot_dimension_numbers<[1], [0], [0], [1], [0, 0, 1, 1], [], []>} : vector<16x128xbf16>, vector<128x128xbf16>, vector<16x128xf32> -> vector<16x128xf32>
    %c0_26 = arith.constant 0 : index
    %c0_27 = arith.constant 0 : index
    %49 = vector.load %arg8[%c0_26, %c0_27] : memref<1x128xf32, #tpu.memory_space<vmem>>, vector<1x128xf32>
    %50 = vector.broadcast %49 : vector<1x128xf32> to vector<16x128xf32>
    %51 = arith.addf %48, %50 : vector<16x128xf32>
    %c0_28 = arith.constant 0 : index
    %c0_29 = arith.constant 0 : index
    %52 = vector.load %arg9[%c0_28, %c0_29] : memref<16x128xf32, #tpu.memory_space<vmem>>, vector<16x128xf32>
    tpu.vector_store %arg9[%c0_28, %c0_29], %51 {strides = array<i32>} : memref<16x128xf32, #tpu.memory_space<vmem>>, vector<16x128xf32>,
    return
  }
  func.func @transform_0(%arg0: i32) -> (i32, i32) {
    %c0_i32 = arith.constant 0 : i32
    %c0_i32_0 = arith.constant 0 : i32
    return %arg0, %c0_i32 : i32, i32
  }
  func.func @transform_1(%arg0: i32) -> (i32, i32) {
    %c0_i32 = arith.constant 0 : i32
    %c0_i32_0 = arith.constant 0 : i32
    return %arg0, %c0_i32 : i32, i32
  }
  func.func @transform_2(%arg0: i32) -> (i32, i32) {
    %c0_i32 = arith.constant 0 : i32
    %c0_i32_0 = arith.constant 0 : i32
    %c0_i32_1 = arith.constant 0 : i32
    return %c0_i32, %c0_i32_0 : i32, i32
  }
  func.func @transform_3(%arg0: i32) -> (i32, i32) {
    %c0_i32 = arith.constant 0 : i32
    %c0_i32_0 = arith.constant 0 : i32
    %c0_i32_1 = arith.constant 0 : i32
    return %c0_i32, %c0_i32_0 : i32, i32
  }
  func.func @transform_4(%arg0: i32) -> (i32, i32) {
    %c0_i32 = arith.constant 0 : i32
    %c0_i32_0 = arith.constant 0 : i32
    %c0_i32_1 = arith.constant 0 : i32
    return %c0_i32, %c0_i32_0 : i32, i32
  }
  func.func @transform_5(%arg0: i32) -> (i32, i32) {
    %c0_i32 = arith.constant 0 : i32
    %c0_i32_0 = arith.constant 0 : i32
    %c0_i32_1 = arith.constant 0 : i32
    return %c0_i32, %c0_i32_0 : i32, i32
  }
  func.func @transform_6(%arg0: i32) -> (i32, i32) {
    %c0_i32 = arith.constant 0 : i32
    %c0_i32_0 = arith.constant 0 : i32
    %c0_i32_1 = arith.constant 0 : i32
    return %c0_i32, %c0_i32_0 : i32, i32
  }
  func.func @transform_7(%arg0: i32) -> (i32, i32) {
    %c0_i32 = arith.constant 0 : i32
    %c0_i32_0 = arith.constant 0 : i32
    %c0_i32_1 = arith.constant 0 : i32
    return %c0_i32, %c0_i32_0 : i32, i32
  }
  func.func @transform_8(%arg0: i32) -> (i32, i32) {
    %c0_i32 = arith.constant 0 : i32
    %c0_i32_0 = arith.constant 0 : i32
    return %arg0, %c0_i32 : i32, i32
  }
  func.func @transform_9(%arg0: i32) -> (i32, i32) {
    %c0_i32 = arith.constant 0 : i32
    %c0_i32_0 = arith.constant 0 : i32
    return %arg0, %c0_i32 : i32, i32
  }
}

</mosaic_0001>

<bundles_post_ra>
// kernel: tpu_custom_call.1
= control target key start
LH: loop header
LB: loop body
LE: loop exit
PB: predicated region body
PF: predicated region fallthrough
CT: control target
= control target key end

     0   :  { %15 = vsyncpa [#allocation3], 0  ;;  %s1752_s0 = inlined_call_operand.vmem [shape: bf16[128,16], index: 0, kind: input, shape index: {}]   ;;  %s1753_s1 = inlined_call_operand.hbm [shape: f32[128,128], index: 1, kind: input, shape index: {}]   ;;  %s1754_s2 = inlined_call_operand.vmem [shape: bf16[16,128], index: 2, kind: input, shape index: {}]   ;;  %s1755_s3 = inlined_call_operand.vmem [shape: f32[1,128], index: 3, kind: input, shape index: {}]   ;;  %s1756_s4 = inlined_call_operand.hbm [shape: bf16[32,128], index: 4, kind: input, shape index: {}]   ;;  %s1757_s5 = inlined_call_operand.vmem [shape: f32[1,128], index: 5, kind: input, shape index: {}]   ;;  %s1758_s6 = inlined_call_operand.vmem [shape: bf16[128,128], index: 6, kind: input, shape index: {}]   ;;  %s1759_s7 = inlined_call_operand.vmem [shape: f32[1,128], index: 7, kind: input, shape index: {}]   ;;  %s1760_s8 = inlined_call_operand.hbm [shape: f32[16,128], index: 8, kind: output, shape index: {0}]   ;;  %s1761_s9 = inlined_call_operand.vmem [shape: f32[128,32], index: 9, kind: output, shape index: {1}]  }
   0x1   :  { %16 = vsyncpa [#allocation6], 0 }
   0x2   :  { %17 = vsyncpa [#allocation4], 0  ;;  %s24_s11 = sshll.u32 %s1753_s1, 4  ;;  %s1272_s12 = smov [#allocation2]   ;;  %s25_s11 = int_to_ptr.hbm [resolvable:$true] %s24_s11 }
   0x3   :  { %s26_s13 = sshll.u32 %s1272_s12, 4  ;;  %s41_s16 = sshll.u32 %s1756_s4, 4  ;;  %s27_s13 = int_to_ptr.vmem [resolvable:$true] %s26_s13  ;;  %s42_s16 = int_to_ptr.hbm [resolvable:$true] %s41_s16 }
   0x4   :  { %s1273_s17 = smov 128   ;;  %s1274_s18 = smov 8  }
   0x5   :  { %32 = dma.hbm_to_vmem [thread:$0]  %s25_s11, 2048, %s27_s13, [#allocation3], %s1273_s17, %s1273_s17, %s1274_s18  }
   0x6   :  { %s1275_s19 = smov [#allocation5]   ;;  %s1276_s21 = smov 64  }
   0x7   :  { %s43_s20 = sshll.u32 %s1275_s19, 4  ;;  %s1277_s1 = smov 4   ;;  %s44_s20 = int_to_ptr.vmem [resolvable:$true] %s43_s20 }
   0x8   :  { %49 = dma.hbm_to_vmem [thread:$0]  %s42_s16, 256, %s44_s20, [#allocation6], %s1276_s21, %s1276_s21, %s1277_s1  }
   0x9   :  { %1266 = dma.done.wait [#allocation3], 2048  }
   0xa   :  { %1267 = vsyncadd [#allocation3], 4294965248 }
   0xb   :  { %1268 = dma.done.wait [#allocation6], 256  }
   0xc   :  { %1269 = vsyncadd [#allocation6], 4294967040  ;;  %v1096_v0 = vld [vmem:[%s1754_s2] sm:$0xff]  ;;  %vm133_vm0 = vcmask 130048   ;;  %v1089_v2 = vld [vmem:[%s1752_s0 + $0x8] sm:$0xff]  ;;  %vm255_vm1 = vcmask 261120  }
   0xd   :  { %v1088_v1 = vld [vmem:[%s1752_s0] sm:$0xff]  ;;  %165 = vmatpush.bf16.msra.mxu0 %v1096_v0  ;;  %v1090_v3 = vld [vmem:[%s1752_s0 + $0x10] sm:$0xff]  ;;  %v1091_v4 = vld [vmem:[%s1752_s0 + $0x18] sm:$0xff]  ;;  %vm833_vm3 = vcmask 1041409   ;;  %vm835_vm4 = vcmask 1042434   ;;  %vm837_vm5 = vcmask 1043459  }
   0xe   :  { %v1092_v5 = vld [vmem:[%s1752_s0 + $0x20] sm:$0xff]  ;;  %v1093_v6 = vld [vmem:[%s1752_s0 + $0x28] sm:$0xff]  ;;  %v1094_v7 = vld [vmem:[%s1752_s0 + $0x30] sm:$0xff]  ;;  %vm839_vm6 = vcmask 1044484   ;;  %vm841_vm7 = vcmask 1045509   ;;  %vm843_vm8 = vcmask 1046534  }
   0xf   :  { %v1095_v8 = vld [vmem:[%s1752_s0 + $0x38] sm:$0xff]  ;;  %v1125_v16 = vld [vmem:[%s1755_s3] ss:$0 sm:$0xff]  ;;  %s1278_s0 = smov 96   ;;  %s1279_s3 = smov 32   ;;  %vm845_vm9 = vcmask 1047559  }
  0x10   :  { %1031 = vmatmul.msk.bf16.vlgmr.msra.gmra.mxu0 %vm133_vm0, %v1088_v1 }
  0x20   :  { %1032 = vmatmul.msk.bf16.gmra.mxu0 %vm133_vm0, %v1089_v2 }
  0x30   :  { %1033 = vmatmul.msk.bf16.gmra.mxu0 %vm133_vm0, %v1090_v3 }
  0x40   :  { %1034 = vmatmul.msk.bf16.gmra.mxu0 %vm133_vm0, %v1091_v4 }
  0x50   :  { %1035 = vmatmul.msk.bf16.gmra.mxu0 %vm133_vm0, %v1092_v5 }
  0x60   :  { %1036 = vmatmul.msk.bf16.gmra.mxu0 %vm133_vm0, %v1093_v6 }
  0x70   :  { %1037 = vmatmul.msk.bf16.gmra.mxu0 %vm133_vm0, %v1094_v7 }
  0x80   :  { %1038 = vmatmul.msk.bf16.gmra.mxu0 %vm133_vm0, %v1095_v8 }
  0x8d   :  { %v167_v9 = vpop.f32.mrf.mxu0 }
  0x8e   :  { %v1392_v27 = vadd.f32 %v1125_v16, %v167_v9 }
  0x95   :  { %v169_v10 = vpop.f32.mrf.mxu0 }
  0x96   :  { %v1390_v25 = vadd.f32 %v1125_v16, %v169_v10 }
  0x98   :  { %v1396_v28 = vpack.c.bf16 %v1390_v25, %v1392_v27 }
  0x9d   :  { %v172_v11 = vpop.f32.mrf.mxu0 }
  0x9e   :  { %v1440_v48 = vadd.f32 %v1125_v16, %v172_v11 }
  0xa5   :  { %v174_v12 = vpop.f32.mrf.mxu0 }
  0xa6   :  { %v1438_v47 = vadd.f32 %v1125_v16, %v174_v12 }
  0xa8   :  { %v1444_v49 = vpack.c.bf16 %v1438_v47, %v1440_v48 }
  0xad   :  { %v177_v13 = vpop.f32.mrf.mxu0 }
  0xae   :  { %v1382_v23 = vadd.f32 %v1125_v16, %v177_v13 }
  0xb5   :  { %v179_v14 = vpop.f32.mrf.mxu0 }
  0xb6   :  { %v1380_v21 = vadd.f32 %v1125_v16, %v179_v14 }
  0xb8   :  { %v1386_v24 = vpack.c.bf16 %v1380_v21, %v1382_v23 }
  0xbd   :  { %v182_v15 = vpop.f32.mrf.mxu0 }
  0xbe   :  { %v1373_v18 = vadd.f32 %v1125_v16, %v182_v15 }
  0xc5   :  { %v184_v17 = vpop.f32.mrf.mxu0 }
  0xc6   :  { %v1375_v19 = vadd.f32 %v1125_v16, %v184_v17 }
  0xc8   :  { %v210_v20 = vpack.c.bf16 %v1375_v19, %v1373_v18 }
  0xca   :  { %245 = vrot.lane.b32.xlu2 %v210_v20, %s1276_s21 }
  0xcd   :  { %v187_v22 = vpop.f32.mrf.mxu0 }
  0xce   :  { %v1410_v36 = vadd.f32 %v1125_v16, %v187_v22 }
  0xd2   :  { %243 = vrot.lane.b32.xlu2 %v1386_v24, %s1276_s21 }
  0xd5   :  { %v189_v26 = vpop.f32.mrf.mxu0 }
  0xd6   :  { %v1408_v34 = vadd.f32 %v1125_v16, %v189_v26  ;;  %v370_v26 = vld [vmem:[#allocation2 + $0x8] sm:$0xff] }
  0xd8   :  { %v211_v37 = vpack.c.bf16 %v1408_v34, %v1410_v36 }
  0xda   :  { %223 = vrot.lane.b32.xlu2 %v1396_v28, %s1278_s0 }
  0xdd   :  { %v192_v29 = vpop.f32.mrf.mxu0 }
  0xde   :  { %v1401_v31 = vadd.f32 %v1125_v16, %v192_v29 }
  0xe2   :  { %229 = vrot.lane.b32.xlu2 %v210_v20, %s1278_s0 }
  0xe5   :  { %v194_v30 = vpop.f32.mrf.mxu0 }
  0xe6   :  { %v1403_v32 = vadd.f32 %v1125_v16, %v194_v30 }
  0xe8   :  { %v212_v33 = vpack.c.bf16 %v1403_v32, %v1401_v31 }
  0xea   :  { %249 = vrot.lane.b32.xlu1 %v212_v33, %s1276_s21 }
  0xed   :  { %v197_v35 = vpop.f32.mrf.mxu0 }
  0xee   :  { %v1415_v39 = vadd.f32 %v1125_v16, %v197_v35  ;;  %v371_v35 = vld [vmem:[#allocation2 + $0x10] sm:$0xff] }
  0xf2   :  { %247 = vrot.lane.b32.xlu1 %v211_v37, %s1276_s21 }
  0xf5   :  { %v199_v38 = vpop.f32.mrf.mxu0 }
  0xf6   :  { %v1417_v40 = vadd.f32 %v1125_v16, %v199_v38 }
  0xf8   :  { %v213_v41 = vpack.c.bf16 %v1417_v40, %v1415_v39 }
  0xfa   :  { %235 = vrot.lane.b32.xlu2 %v213_v41, %s1278_s0  ;;  %239 = vrot.lane.b32.xlu1 %v1396_v28, %s1276_s21 }
  0xfd   :  { %v202_v42 = vpop.f32.mrf.mxu0 }
  0xfe   :  { %v1427_v44 = vadd.f32 %v1125_v16, %v202_v42  ;;  %v372_v42 = vld [vmem:[#allocation2 + $0x18] sm:$0xff] }
 0x102   :  { %563 = vrot.lane.b32.xlu2 %v212_v33, %s1279_s3  ;;  %227 = vrot.lane.b32.xlu1 %v1386_v24, %s1278_s0 }
 0x105   :  { %v204_v43 = vpop.f32.mrf.mxu0 }
 0x106   :  { %v1429_v45 = vadd.f32 %v1125_v16, %v204_v43  ;;  %v369_v16 = vld [vmem:[#allocation2] sm:$0xff] }
 0x108   :  { %v214_v46 = vpack.c.bf16 %v1429_v45, %v1427_v44 }
 0x10a   :  { %253 = vrot.lane.b32.xlu0 %v214_v46, %s1276_s21  ;;  %559 = vrot.lane.b32.xlu2 %v210_v20, %s1279_s3 }
 0x10b   :  { %233 = vrot.lane.b32.xlu1 %v212_v33, %s1278_s0 }
 0x112   :  { %251 = vrot.lane.b32.xlu0 %v213_v41, %s1276_s21 }
 0x113   :  { %565 = vrot.lane.b32.xlu1 %v213_v41, %s1279_s3 }
 0x11a   :  { %241 = vrot.lane.b32.xlu0 %v1444_v49, %s1276_s21 }
 0x122   :  { %225 = vrot.lane.b32.xlu0 %v1444_v49, %s1278_s0 }
 0x124   :  { %v246_v55 = vpop.permute.xlu2 %245 }
 0x125   :  { %v290_v0 = vsel %vm255_vm1, %v246_v55, 0  ;;  %v374_v55 = vld [vmem:[#allocation2 + $0x28] sm:$0xff] }
 0x12a   :  { %231 = vrot.lane.b32.xlu0 %v211_v37, %s1278_s0 }
 0x12c   :  { %v244_v60 = vpop.permute.xlu2 %243 }
 0x12d   :  { %v287_v4 = vsel %vm255_vm1, %v244_v60, 0 }
 0x132   :  { %237 = vrot.lane.b32.xlu0 %v214_v46, %s1278_s0 }
 0x134   :  { %v224_v1 = vpop.permute.xlu2 %223 }
 0x13a   :  { %561 = vrot.lane.b32.xlu0 %v211_v37, %s1279_s3 }
 0x13c   :  { %v230_v5 = vpop.permute.xlu2 %229 }
 0x142   :  { %567 = vrot.lane.b32.xlu0 %v214_v46, %s1279_s3 }
 0x154   :  { %v236_v9 = vpop.permute.xlu2 %235 }
 0x15c   :  { %v250_v54 = vpop.permute.xlu1 %249  ;;  %v564_v13 = vpop.permute.xlu2 %563 }
 0x15d   :  { %v296_v57 = vsel %vm255_vm1, %v250_v54, 0 }
 0x164   :  { %v248_v58 = vpop.permute.xlu1 %247  ;;  %v560_v14 = vpop.permute.xlu2 %559 }
 0x165   :  { %v293_v61 = vsel %vm255_vm1, %v248_v58, 0 }
 0x16c   :  { %v240_v62 = vpop.permute.xlu1 %239 }
 0x16d   :  { %v281_v11 = vsel %vm255_vm1, %v240_v62, 0 }
 0x174   :  { %v228_v2 = vpop.permute.xlu1 %227 }
 0x17c   :  { %v254_v50 = vpop.permute.xlu0 %253 }
 0x17d   :  { %v302_v51 = vsel %vm255_vm1, %v254_v50, 0  ;;  %v234_v8 = vpop.permute.xlu1 %233 }
 0x17e   :  { %304 = vmatpush.bf16.xpose.msra.mxu1 %v302_v51  ;;  %1107 = vmatpush.bf16.xpose.msra.mxu3 %v302_v51  ;;  %v373_v51 = vld [vmem:[#allocation2 + $0x20] sm:$0xff] }
 0x184   :  { %v252_v52 = vpop.permute.xlu0 %251 }
 0x185   :  { %v299_v53 = vsel %vm255_vm1, %v252_v52, 0  ;;  %v566_v12 = vpop.permute.xlu1 %565 }
 0x186   :  { %305 = vmatpush.bf16.xpose.msra.mxu1 %v299_v53  ;;  %1108 = vmatpush.bf16.xpose.msra.mxu3 %v299_v53 }
 0x18c   :  { %v242_v56 = vpop.permute.xlu0 %241 }
 0x18d   :  { %v284_v7 = vsel %vm255_vm1, %v242_v56, 0 }
 0x18e   :  { %306 = vmatpush.bf16.xpose.msra.mxu1 %v296_v57  ;;  %1109 = vmatpush.bf16.xpose.msra.mxu3 %v296_v57 }
 0x194   :  { %v226_v59 = vpop.permute.xlu0 %225 }
 0x196   :  { %307 = vmatpush.bf16.xpose.msra.mxu1 %v293_v61  ;;  %1110 = vmatpush.bf16.xpose.msra.mxu3 %v293_v61 }
 0x19c   :  { %v232_v63 = vpop.permute.xlu0 %231 }
 0x19e   :  { %308 = vmatpush.bf16.xpose.msra.mxu1 %v290_v0  ;;  %1111 = vmatpush.bf16.xpose.msra.mxu3 %v290_v0 }
 0x1a4   :  { %v238_v3 = vpop.permute.xlu0 %237 }
 0x1a6   :  { %309 = vmatpush.bf16.xpose.msra.mxu1 %v287_v4  ;;  %1112 = vmatpush.bf16.xpose.msra.mxu3 %v287_v4  ;;  %v377_v4 = vld [vmem:[#allocation2 + $0x40] sm:$0xff] }
 0x1ac   :  { %v562_v6 = vpop.permute.xlu0 %561 }
 0x1ae   :  { %310 = vmatpush.bf16.xpose.msra.mxu1 %v284_v7  ;;  %1113 = vmatpush.bf16.xpose.msra.mxu3 %v284_v7 }
 0x1b4   :  { %v568_v10 = vpop.permute.xlu0 %567 }
 0x1b5   :  { %577 = vmatpush.bf16.msra.mxu2 %v568_v10 }
 0x1b6   :  { %311 = vmatpush.bf16.xpose.msra.mxu1 %v281_v11  ;;  %1114 = vmatpush.bf16.xpose.msra.mxu3 %v281_v11 }
 0x1b9   :  { %578 = vmatpush.bf16.msra.mxu2 %v566_v12 }
 0x1bd   :  { %1039 = vmatmul.msk.bf16.vlgmr.msra.gmra.mxu1 %vm255_vm1, %v224_v1  ;;  %1045 = vmatmul.msk.bf16.vlgmr.msra.gmra.mxu3 %vm255_vm1, %v236_v9 }
 0x1be   :  { %579 = vmatpush.bf16.msra.mxu2 %v564_v13 }
 0x1c2   :  { %580 = vmatpush.bf16.msra.mxu2 %v562_v6 }
 0x1c6   :  { %581 = vmatpush.bf16.msra.mxu2 %v560_v14 }
 0x1cd   :  { %1040 = vmatmul.msk.bf16.gmra.mxu1 %vm255_vm1, %v226_v59  ;;  %1046 = vmatmul.msk.bf16.gmra.mxu3 %vm255_vm1, %v238_v3  ;;  %v375_v59 = vld [vmem:[#allocation2 + $0x30] sm:$0xff] }
 0x1dd   :  { %1041 = vmatmul.msk.bf16.gmra.mxu1 %vm255_vm1, %v228_v2 }
 0x1ed   :  { %1042 = vmatmul.msk.bf16.gmra.mxu1 %vm255_vm1, %v230_v5 }
 0x1fd   :  { %1043 = vmatmul.msk.bf16.gmra.mxu1 %vm255_vm1, %v232_v63  ;;  %v376_v63 = vld [vmem:[#allocation2 + $0x38] sm:$0xff] }
 0x20d   :  { %1044 = vmatmul.msk.bf16.gmra.mxu1 %vm255_vm1, %v234_v8 }
 0x23a   :  { %v313_v15 = vpop.f32.mrf.mxu1 }
 0x23b   :  { %v353_v17 = vmul.f32 0.17677669, %v313_v15 }
 0x23d   :  { %v385_v20 = vadd.f32 %v369_v16, %v353_v17 }
 0x23f   :  { %401 = vmax.xlane.f32.xlu1 %v385_v20 }
 0x240   :  { %v343_v17 = vpop.f32.mrf.mxu3 }
 0x242   :  { %v315_v22 = vpop.f32.mrf.mxu1 }
 0x243   :  { %v354_v29 = vmul.f32 0.17677669, %v315_v22 }
 0x245   :  { %v386_v30 = vadd.f32 %v370_v26, %v354_v29 }
 0x247   :  { %403 = vmax.xlane.f32.xlu2 %v386_v30 }
 0x248   :  { %v345_v29 = vpop.f32.mrf.mxu3 }
 0x24a   :  { %v318_v33 = vpop.f32.mrf.mxu1 }
 0x24b   :  { %v355_v37 = vmul.f32 0.17677669, %v318_v33 }
 0x24d   :  { %v1470_v38 = vadd.f32 %v371_v35, %v355_v37 }
 0x24f   :  { %405 = vmax.xlane.f32.xlu0 %v1470_v38 }
 0x252   :  { %v320_v41 = vpop.f32.mrf.mxu1 }
 0x253   :  { %v356_v43 = vmul.f32 0.17677669, %v320_v41 }
 0x255   :  { %v388_v46 = vadd.f32 %v372_v42, %v356_v43 }
 0x257   :  { %407 = vmax.xlane.f32.xlu2 %v388_v46 }
 0x25a   :  { %v323_v50 = vpop.f32.mrf.mxu1 }
 0x25b   :  { %v357_v52 = vmul.f32 0.17677669, %v323_v50 }
 0x25d   :  { %v1473_v53 = vadd.f32 %v373_v51, %v357_v52 }
 0x25f   :  { %409 = vmax.xlane.f32.xlu1 %v1473_v53 }
 0x262   :  { %v325_v54 = vpop.f32.mrf.mxu1 }
 0x263   :  { %v358_v56 = vmul.f32 0.17677669, %v325_v54 }
 0x265   :  { %v390_v57 = vadd.f32 %v374_v55, %v358_v56 }
 0x267   :  { %411 = vmax.xlane.f32.xlu2 %v390_v57 }
 0x26a   :  { %v328_v58 = vpop.f32.mrf.mxu1 }
 0x26b   :  { %v359_v60 = vmul.f32 0.17677669, %v328_v58  ;;  %v384_v58 = vld [vmem:[#allocation2 + $0x78] sm:$0xff] }
 0x26d   :  { %v391_v61 = vadd.f32 %v375_v59, %v359_v60 }
 0x26f   :  { %413 = vmax.xlane.f32.xlu1 %v391_v61 }
 0x272   :  { %v330_v62 = vpop.f32.mrf.mxu1 }
 0x273   :  { %v360_v0 = vmul.f32 0.17677669, %v330_v62 }
 0x275   :  { %v1476_v1 = vadd.f32 %v376_v63, %v360_v0 }
 0x277   :  { %415 = vmax.xlane.f32.xlu0 %v1476_v1 }
 0x27a   :  { %v333_v2 = vpop.f32.mrf.mxu1 }
 0x27b   :  { %v361_v3 = vmul.f32 0.17677669, %v333_v2 }
 0x27d   :  { %v1481_v7 = vadd.f32 %v377_v4, %v361_v3 }
 0x282   :  { %v335_v14 = vpop.f32.mrf.mxu1 }
 0x283   :  { %v362_v2 = vmul.f32 0.17677669, %v335_v14 }
 0x28a   :  { %v338_v22 = vpop.f32.mrf.mxu1 }
 0x28b   :  { %557 = vrot.lane.b32.xlu0 %v1386_v24, %s1279_s3  ;;  %v363_v26 = vmul.f32 0.17677669, %v338_v22  ;;  %v381_v22 = vld [vmem:[#allocation2 + $0x60] sm:$0xff] }
 0x2b2   :  { %v402_v5 = vpop.xlane.xlu1 %401 }
 0x2b3   :  { %v433_v6 = vsub.f32 %v385_v20, %v402_v5  ;;  %v340_v5 = vpop.f32.mrf.mxu1 }
 0x2b5   :  { %v449_v8 = vmul.f32 1.442695, %v433_v6  ;;  %417 = vmax.xlane.f32.xlu0 %v1481_v7  ;;  %v366_v6 = vmul.f32 0.17677669, %v345_v29 }
 0x2b7   :  { %1128 = vpow2.f32 %v449_v8  ;;  %v364_v8 = vmul.f32 0.17677669, %v340_v5 }
 0x2ba   :  { %v404_v9 = vpop.xlane.xlu2 %403 }
 0x2bb   :  { %v434_v10 = vsub.f32 %v386_v30, %v404_v9  ;;  %v379_v30 = vld [vmem:[#allocation2 + $0x50] sm:$0xff]  ;;  %v380_v9 = vld [vmem:[#allocation2 + $0x58] sm:$0xff] }
 0x2bc   :  { %v1495_v41 = vadd.f32 %v379_v30, %v363_v26 }
 0x2bd   :  { %v1484_v11 = vpop.eup %1128  ;;  %v451_v12 = vmul.f32 1.442695, %v434_v10 }
 0x2be   :  { %481 = vadd.xlane.f32.xlu2 %v1484_v11 }
 0x2bf   :  { %1130 = vpow2.f32 %v451_v12  ;;  %v1523_v12 = vadd.f32 %v380_v9, %v364_v8 }
 0x2c2   :  { %v406_v55 = vpop.xlane.xlu0 %405 }
 0x2c5   :  { %v1487_v24 = vpop.eup %1130 }
 0x2c6   :  { %483 = vadd.xlane.f32.xlu1 %v1487_v24 }
 0x2ca   :  { %v408_v13 = vpop.xlane.xlu2 %407 }
 0x2cb   :  { %v436_v15 = vsub.f32 %v388_v46, %v408_v13  ;;  %v348_v46 = vpop.f32.mrf.mxu3 }
 0x2cc   :  { %v367_v13 = vmul.f32 0.17677669, %v348_v46 }
 0x2cd   :  { %v455_v16 = vmul.f32 1.442695, %v436_v15  ;;  %v383_v15 = vld [vmem:[#allocation2 + $0x70] sm:$0xff] }
 0x2ce   :  { %v1527_v26 = vadd.f32 %v383_v15, %v367_v13 }
 0x2cf   :  { %1132 = vpow2.f32 %v455_v16  ;;  %v365_v16 = vmul.f32 0.17677669, %v343_v17 }
 0x2d1   :  { %v1530_v30 = vadd.f32 %v381_v22, %v365_v16 }
 0x2d2   :  { %v410_v33 = vpop.xlane.xlu1 %409 }
 0x2d3   :  { %v350_v54 = vpop.f32.mrf.mxu3 }
 0x2d4   :  { %v368_v56 = vmul.f32 0.17677669, %v350_v54 }
 0x2d5   :  { %v1490_v20 = vpop.eup %1132 }
 0x2d6   :  { %487 = vadd.xlane.f32.xlu0 %v1490_v20  ;;  %553 = vrot.lane.b32.xlu2 %v1396_v28, %s1279_s3  ;;  %v1507_v59 = vadd.f32 %v384_v58, %v368_v56 }
 0x2da   :  { %v412_v35 = vpop.xlane.xlu2 %411 }
 0x2db   :  { %v438_v37 = vsub.f32 %v390_v57, %v412_v35  ;;  %v435_v57 = vsub.f32 %v1470_v38, %v406_v55  ;;  %v378_v38 = vld [vmem:[#allocation2 + $0x48] sm:$0xff] }
 0x2dc   :  { %v1517_v4 = vadd.f32 %v378_v38, %v362_v2 }
 0x2dd   :  { %v459_v42 = vmul.f32 1.442695, %v438_v37 }
 0x2de   :  { %421 = vmax.xlane.f32.xlu0 %v1495_v41 }
 0x2df   :  { %1134 = vpow2.f32 %v459_v42  ;;  %555 = vrot.lane.b32.xlu1 %v1444_v49, %s1279_s3  ;;  %v453_v49 = vmul.f32 1.442695, %v435_v57 }
 0x2e2   :  { %v414_v43 = vpop.xlane.xlu1 %413 }
 0x2e3   :  { %v439_v50 = vsub.f32 %v391_v61, %v414_v43  ;;  %v437_v61 = vsub.f32 %v1473_v53, %v410_v33  ;;  %v382_v53 = vld [vmem:[#allocation2 + $0x68] sm:$0xff] }
 0x2e4   :  { %v1520_v10 = vadd.f32 %v382_v53, %v366_v6 }
 0x2e5   :  { %v1500_v51 = vpop.eup %1134  ;;  %v461_v28 = vmul.f32 1.442695, %v439_v50  ;;  %v457_v62 = vmul.f32 1.442695, %v437_v61 }
 0x2e6   :  { %491 = vadd.xlane.f32.xlu0 %v1500_v51 }
 0x2e7   :  { %1136 = vpow2.f32 %v461_v28 }
 0x2e8   :  { %1138 = vpow2.f32 %v453_v49 }
 0x2e9   :  { %1140 = vpow2.f32 %v457_v62 }
 0x2ea   :  { %v416_v60 = vpop.xlane.xlu0 %415 }
 0x2eb   :  { %v440_v14 = vsub.f32 %v1476_v1, %v416_v60 }
 0x2ed   :  { %v1503_v52 = vpop.eup %1136  ;;  %v463_v29 = vmul.f32 1.442695, %v440_v14 }
 0x2ee   :  { %493 = vadd.xlane.f32.xlu0 %v1503_v52  ;;  %v1511_v0 = vpop.eup %1138 }
 0x2ef   :  { %v1514_v3 = vpop.eup %1140  ;;  %1142 = vpow2.f32 %v463_v29 }
 0x2f5   :  { %v1533_v33 = vpop.eup %1142 }
 0x2f6   :  { %431 = vmax.xlane.f32.xlu0 %v1507_v59 }
 0x2fd   :  { %v558_v63 = vpop.permute.xlu0 %557 }
 0x2fe   :  { %582 = vmatpush.bf16.msra.mxu2 %v558_v63 }
 0x2ff   :  { %485 = vadd.xlane.f32.xlu2 %v1511_v0 }
 0x307   :  { %489 = vadd.xlane.f32.xlu2 %v1514_v3 }
 0x309   :  { %419 = vmax.xlane.f32.xlu1 %v1517_v4 }
 0x30f   :  { %427 = vmax.xlane.f32.xlu2 %v1520_v10 }
 0x311   :  { %423 = vmax.xlane.f32.xlu1 %v1523_v12 }
 0x317   :  { %429 = vmax.xlane.f32.xlu2 %v1527_v26 }
 0x319   :  { %425 = vmax.xlane.f32.xlu1 %v1530_v30 }
 0x321   :  { %495 = vadd.xlane.f32.xlu1 %v1533_v33 }
 0x328   :  { %v418_v35 = vpop.xlane.xlu0 %417 }
 0x329   :  { %v441_v1 = vsub.f32 %v1481_v7, %v418_v35 }
 0x32b   :  { %v465_v37 = vmul.f32 1.442695, %v441_v1 }
 0x32d   :  { %1144 = vpow2.f32 %v465_v37 }
 0x331   :  { %v482_v43 = vpop.xlane.xlu2 %481 }
 0x333   :  { %v1537_v17 = vpop.eup %1144 }
 0x334   :  { %497 = vadd.xlane.f32.xlu1 %v1537_v17 }
 0x339   :  { %v484_v42 = vpop.xlane.xlu1 %483  ;;  %v554_v58 = vpop.permute.xlu2 %553 }
 0x33a   :  { %1146 = vrcp.f32 %v484_v42 }
 0x33b   :  { %1148 = vrcp.f32 %v482_v43 }
 0x340   :  { %v1147_v50 = vpop.eup %1146 }
 0x341   :  { %v1149_v55 = vpop.eup %1148  ;;  %v530_v7 = vmul.f32 %v1147_v50, %v1487_v24 }
 0x342   :  { %v529_v49 = vmul.f32 %v1149_v55, %v1484_v11 }
 0x344   :  { %v545_v60 = vpack.c.bf16 %v530_v7, %v529_v49 }
 0x349   :  { %v488_v46 = vpop.xlane.xlu0 %487 }
 0x351   :  { %v422_v28 = vpop.xlane.xlu0 %421  ;;  %v556_v54 = vpop.permute.xlu1 %555 }
 0x352   :  { %v443_v56 = vsub.f32 %v1495_v41, %v422_v28  ;;  %583 = vmatpush.bf16.msra.mxu2 %v556_v54 }
 0x354   :  { %v469_v57 = vmul.f32 1.442695, %v443_v56 }
 0x356   :  { %1150 = vpow2.f32 %v469_v57  ;;  %584 = vmatpush.bf16.msra.mxu2 %v554_v58 }
 0x357   :  { %1152 = vrcp.f32 %v488_v46 }
 0x359   :  { %585 = vmatmul.bf16.vlgmr.msra.gmra.mxu2 %v545_v60  ;;  %v492_v2 = vpop.xlane.xlu0 %491 }
 0x35c   :  { %v1543_v61 = vpop.eup %1150 }
 0x35d   :  { %501 = vadd.xlane.f32.xlu0 %v1543_v61  ;;  %v1153_v63 = vpop.eup %1152 }
 0x35e   :  { %v532_v5 = vmul.f32 %v1153_v63, %v1490_v20 }
 0x361   :  { %v494_v14 = vpop.xlane.xlu0 %493 }
 0x369   :  { %v432_v28 = vpop.xlane.xlu0 %431 }
 0x372   :  { %v486_v62 = vpop.xlane.xlu2 %485 }
 0x373   :  { %1154 = vrcp.f32 %v486_v62  ;;  %v1280_v62 = vmov 8.0  }
 0x379   :  { %v1155_v41 = vpop.eup %1154 }
 0x37a   :  { %v490_v38 = vpop.xlane.xlu2 %489  ;;  %v531_v24 = vmul.f32 %v1155_v41, %v1511_v0 }
 0x37b   :  { %1156 = vrcp.f32 %v490_v38 }
 0x37c   :  { %v420_v11 = vpop.xlane.xlu1 %419  ;;  %v546_v6 = vpack.c.bf16 %v532_v5, %v531_v24  ;;  %1158 = vrcp.f32 %v492_v2 }
 0x37d   :  { %v442_v53 = vsub.f32 %v1517_v4, %v420_v11 }
 0x37e   :  { %590 = vmatmul.bf16.gmra.mxu2 %v546_v6 }
 0x37f   :  { %v467_v8 = vmul.f32 1.442695, %v442_v53 }
 0x381   :  { %1160 = vpow2.f32 %v467_v8  ;;  %v1157_v16 = vpop.eup %1156 }
 0x382   :  { %v428_v9 = vpop.xlane.xlu2 %427  ;;  %v1159_v29 = vpop.eup %1158  ;;  %v533_v4 = vmul.f32 %v1157_v16, %v1514_v3 }
 0x383   :  { %v446_v13 = vsub.f32 %v1520_v10, %v428_v9  ;;  %v534_v37 = vmul.f32 %v1159_v29, %v1500_v51  ;;  %v448_v51 = vsub.f32 %v1507_v59, %v432_v28 }
 0x384   :  { %v424_v15 = vpop.xlane.xlu1 %423 }
 0x385   :  { %v475_v22 = vmul.f32 1.442695, %v446_v13  ;;  %v444_v0 = vsub.f32 %v1523_v12, %v424_v15  ;;  %v547_v43 = vpack.c.bf16 %v534_v37, %v533_v4  ;;  %v479_v55 = vmul.f32 1.442695, %v448_v51 }
 0x387   :  { %v1551_v20 = vpop.eup %1160  ;;  %1162 = vpow2.f32 %v475_v22  ;;  %v471_v35 = vmul.f32 1.442695, %v444_v0 }
 0x388   :  { %499 = vadd.xlane.f32.xlu2 %v1551_v20 }
 0x389   :  { %1164 = vpow2.f32 %v471_v35 }
 0x38a   :  { %v430_v1 = vpop.xlane.xlu2 %429 }
 0x38b   :  { %v447_v10 = vsub.f32 %v1527_v26, %v430_v1 }
 0x38c   :  { %v426_v42 = vpop.xlane.xlu1 %425 }
 0x38d   :  { %v1557_v46 = vpop.eup %1162  ;;  %v477_v12 = vmul.f32 1.442695, %v447_v10  ;;  %v445_v50 = vsub.f32 %v1530_v30, %v426_v42 }
 0x38e   :  { %507 = vadd.xlane.f32.xlu0 %v1557_v46  ;;  %595 = vmatmul.bf16.gmra.mxu2 %v547_v43 }
 0x38f   :  { %v1561_v54 = vpop.eup %1164  ;;  %v473_v3 = vmul.f32 1.442695, %v445_v50  ;;  %1166 = vpow2.f32 %v477_v12 }
 0x390   :  { %503 = vadd.xlane.f32.xlu1 %v1561_v54 }
 0x391   :  { %1168 = vpow2.f32 %v473_v3 }
 0x392   :  { %1170 = vrcp.f32 %v494_v14 }
 0x394   :  { %v496_v26 = vpop.xlane.xlu1 %495 }
 0x395   :  { %1172 = vrcp.f32 %v496_v26  ;;  %v1565_v56 = vpop.eup %1166 }
 0x396   :  { %1174 = vpow2.f32 %v479_v55 }
 0x397   :  { %v1567_v30 = vpop.eup %1168  ;;  %1176 = vrcp.f32 %v1280_v62 }
 0x398   :  { %509 = vadd.xlane.f32.xlu1 %v1565_v56  ;;  %505 = vadd.xlane.f32.xlu2 %v1567_v30  ;;  %v1171_v7 = vpop.eup %1170 }
 0x399   :  { %v535_v58 = vmul.f32 %v1171_v7, %v1503_v52 }
 0x39b   :  { %v1173_v57 = vpop.eup %1172 }
 0x39c   :  { %v536_v59 = vmul.f32 %v1173_v57, %v1533_v33  ;;  %v1573_v60 = vpop.eup %1174 }
 0x39d   :  { %v1177_v63 = vpop.eup %1176 }
 0x39e   :  { %v548_v49 = vpack.c.bf16 %v536_v59, %v535_v58  ;;  %v755_v38 = vmul.f32 8.0, %v1177_v63  ;;  %vm759_vm2 = vweird.f32 %v1177_v63 }
 0x3a0   :  { %511 = vadd.xlane.f32.xlu2 %v1573_v60  ;;  %600 = vmatmul.bf16.gmra.mxu2 %v548_v49  ;;  %v756_v24 = vsub.f32 1.0, %v755_v38 }
 0x3a2   :  { %v757_v53 = vmul.f32 %v1177_v63, %v756_v24 }
 0x3a4   :  { %v758_v15 = vadd.f32 %v1177_v63, %v757_v53 }
 0x3a6   :  { %v1588_v29 = vsel %vm759_vm2, %v1177_v63, %v758_v15 }
 0x3a7   :  { %v498_v43 = vpop.xlane.xlu1 %497 }
 0x3a8   :  { %1178 = vrcp.f32 %v498_v43 }
 0x3ae   :  { %v1179_v51 = vpop.eup %1178 }
 0x3af   :  { %v537_v57 = vmul.f32 %v1179_v51, %v1537_v17 }
 0x3dc   :  { %v586_v41 = vpop.f32.mrf.mxu2 }
 0x3dd   :  { %v587_v2 = vadd.f32 %v586_v41, %v1392_v27  ;;  %v502_v41 = vpop.xlane.xlu0 %501 }
 0x3df   :  { %626 = vst.msk [vmem:[%s1761_s9] sm:$0xff] %vm255_vm1, %v587_v2  ;;  %v642_v52 = vsel %vm255_vm1, %v587_v2, 0.0 }
 0x3e0   :  { %v643_v33 = vrot.slane %v642_v52, 4 }
 0x3e2   :  { %v644_v5 = vadd.f32 %v643_v33, %v642_v52 }
 0x3e4   :  { %v645_v11 = vrot.slane %v644_v5, 2  ;;  %v588_v6 = vpop.f32.mrf.mxu2 }
 0x3e5   :  { %v589_v8 = vadd.f32 %v588_v6, %v1390_v25 }
 0x3e6   :  { %v646_v9 = vadd.f32 %v645_v11, %v644_v5 }
 0x3e7   :  { %627 = vst.msk [vmem:[%s1761_s9 + $0x8] sm:$0xff] %vm255_vm1, %v589_v8  ;;  %v649_v27 = vsel %vm255_vm1, %v589_v8, 0.0 }
 0x3e8   :  { %v647_v13 = vrot.slane %v646_v9, 1  ;;  %v650_v14 = vrot.slane %v649_v27, 4 }
 0x3ea   :  { %v651_v16 = vadd.f32 %v650_v14, %v649_v27  ;;  %v648_v22 = vadd.f32 %v647_v13, %v646_v9 }
 0x3ec   :  { %v652_v0 = vrot.slane %v651_v16, 2  ;;  %v761_v25 = vmul.f32 %v1588_v29, %v648_v22 }
 0x3ee   :  { %v653_v35 = vadd.f32 %v652_v0, %v651_v16  ;;  %v777_v37 = vpack.c.bf16 %v761_v25, %v761_v25 }
 0x3f0   :  { %v654_v4 = vrot.slane %v653_v35, 1  ;;  %v817_v12 = vunpack.c.l.b16 %v777_v37 }
 0x3f2   :  { %v655_v1 = vadd.f32 %v654_v4, %v653_v35 }
 0x3f4   :  { %v762_v10 = vmul.f32 %v1588_v29, %v655_v1 }
 0x3f6   :  { %v778_v42 = vpack.c.bf16 %v762_v10, %v762_v10 }
 0x3f8   :  { %v818_v50 = vunpack.c.l.b16 %v778_v42 }
 0x3fa   :  { %v834_v28 = vsel %vm833_vm3, %v818_v50, %v817_v12 }
 0x3fb   :  { %v500_v3 = vpop.xlane.xlu2 %499 }
 0x3fc   :  { %1180 = vrcp.f32 %v500_v3 }
 0x401   :  { %v591_v26 = vpop.f32.mrf.mxu2 }
 0x402   :  { %v1181_v55 = vpop.eup %1180  ;;  %v592_v7 = vadd.f32 %v591_v26, %v1440_v48 }
 0x403   :  { %v538_v58 = vmul.f32 %v1181_v55, %v1551_v20  ;;  %v504_v62 = vpop.xlane.xlu1 %503 }
 0x404   :  { %628 = vst.msk [vmem:[%s1761_s9 + $0x10] sm:$0xff] %vm255_vm1, %v592_v7  ;;  %v656_v59 = vsel %vm255_vm1, %v592_v7, 0.0  ;;  %1182 = vrcp.f32 %v504_v62 }
 0x405   :  { %v657_v49 = vrot.slane %v656_v59, 4  ;;  %v549_v63 = vpack.c.bf16 %v538_v58, %v537_v57  ;;  %1184 = vrcp.f32 %v502_v41 }
 0x407   :  { %v658_v2 = vadd.f32 %v657_v49, %v656_v59  ;;  %605 = vmatmul.bf16.gmra.mxu2 %v549_v63 }
 0x409   :  { %v659_v38 = vrot.slane %v658_v2, 2  ;;  %v593_v48 = vpop.f32.mrf.mxu2 }
 0x40a   :  { %v594_v17 = vadd.f32 %v593_v48, %v1438_v47  ;;  %v1183_v5 = vpop.eup %1182 }
 0x40b   :  { %v660_v20 = vadd.f32 %v659_v38, %v658_v2  ;;  %v1185_v53 = vpop.eup %1184  ;;  %v540_v47 = vmul.f32 %v1183_v5, %v1561_v54  ;;  %v506_v25 = vpop.xlane.xlu2 %505 }
 0x40c   :  { %629 = vst.msk [vmem:[%s1761_s9 + $0x18] sm:$0xff] %vm255_vm1, %v594_v17  ;;  %v663_v52 = vsel %vm255_vm1, %v594_v17, 0.0  ;;  %v539_v16 = vmul.f32 %v1185_v53, %v1543_v61  ;;  %v508_v54 = vpop.xlane.xlu0 %507  ;;  %1186 = vrcp.f32 %v506_v25 }
 0x40d   :  { %v661_v33 = vrot.slane %v660_v20, 1  ;;  %v664_v24 = vrot.slane %v663_v52, 4  ;;  %1188 = vrcp.f32 %v508_v54 }
 0x40e   :  { %v550_v1 = vpack.c.bf16 %v540_v47, %v539_v16 }
 0x40f   :  { %v662_v11 = vadd.f32 %v661_v33, %v660_v20  ;;  %v665_v6 = vadd.f32 %v664_v24, %v663_v52 }
 0x411   :  { %v763_v8 = vmul.f32 %v1588_v29, %v662_v11  ;;  %v666_v9 = vrot.slane %v665_v6, 2  ;;  %v596_v27 = vpop.f32.mrf.mxu2 }
 0x412   :  { %v597_v13 = vadd.f32 %v596_v27, %v1382_v23  ;;  %v1187_v7 = vpop.eup %1186 }
 0x413   :  { %v779_v14 = vpack.c.bf16 %v763_v8, %v763_v8  ;;  %v667_v15 = vadd.f32 %v666_v9, %v665_v6  ;;  %v1189_v49 = vpop.eup %1188  ;;  %v541_v63 = vmul.f32 %v1187_v7, %v1567_v30  ;;  %v512_v52 = vpop.xlane.xlu2 %511 }
 0x414   :  { %630 = vst.msk [vmem:[%s1761_s9 + $0x20] sm:$0xff] %vm255_vm1, %v597_v13  ;;  %v670_v22 = vsel %vm255_vm1, %v597_v13, 0.0  ;;  %v542_v48 = vmul.f32 %v1189_v49, %v1557_v46  ;;  %v510_v30 = vpop.xlane.xlu1 %509  ;;  %1190 = vrcp.f32 %v512_v52 }
 0x415   :  { %v819_v0 = vunpack.c.l.b16 %v779_v14  ;;  %v668_v35 = vrot.slane %v667_v15, 1  ;;  %v671_v4 = vrot.slane %v670_v22, 4  ;;  %1192 = vrcp.f32 %v510_v30 }
 0x416   :  { %v551_v24 = vpack.c.bf16 %v542_v48, %v541_v63 }
 0x417   :  { %v836_v23 = vsel %vm835_vm4, %v819_v0, %v834_v28  ;;  %v669_v37 = vadd.f32 %v668_v35, %v667_v15  ;;  %v672_v10 = vadd.f32 %v671_v4, %v670_v22  ;;  %610 = vmatmul.bf16.gmra.mxu2 %v550_v1 }
 0x419   :  { %v764_v61 = vmul.f32 %v1588_v29, %v669_v37  ;;  %v673_v42 = vrot.slane %v672_v10, 2  ;;  %v598_v43 = vpop.f32.mrf.mxu2 }
 0x41a   :  { %v599_v12 = vadd.f32 %v598_v43, %v1380_v21  ;;  %v1191_v15 = vpop.eup %1190 }
 0x41b   :  { %v780_v50 = vpack.c.bf16 %v764_v61, %v764_v61  ;;  %v674_v3 = vadd.f32 %v673_v42, %v672_v10  ;;  %v1193_v25 = vpop.eup %1192 }
 0x41c   :  { %631 = vst.msk [vmem:[%s1761_s9 + $0x28] sm:$0xff] %vm255_vm1, %v599_v12  ;;  %v677_v28 = vsel %vm255_vm1, %v599_v12, 0.0  ;;  %v543_v37 = vmul.f32 %v1193_v25, %v1565_v56 }
 0x41d   :  { %v820_v51 = vunpack.c.l.b16 %v780_v50  ;;  %v675_v26 = vrot.slane %v674_v3, 1  ;;  %v678_v55 = vrot.slane %v677_v28, 4 }
 0x41f   :  { %v838_v57 = vsel %vm837_vm5, %v820_v51, %v836_v23  ;;  %v676_v58 = vadd.f32 %v675_v26, %v674_v3  ;;  %v679_v59 = vadd.f32 %v678_v55, %v677_v28 }
 0x421   :  { %v765_v21 = vmul.f32 %v1588_v29, %v676_v58  ;;  %v680_v62 = vrot.slane %v679_v59, 2 }
 0x423   :  { %v781_v41 = vpack.c.bf16 %v765_v21, %v765_v21  ;;  %v681_v2 = vadd.f32 %v680_v62, %v679_v59  ;;  %v601_v38 = vpop.f32.mrf.mxu2 }
 0x424   :  { %v602_v17 = vadd.f32 %v601_v38, %v1373_v18  ;;  %v1098_v38 = vld [vmem:[#allocation5 + $0x8] sm:$0xff] }
 0x425   :  { %v821_v20 = vunpack.c.l.b16 %v781_v41  ;;  %v682_v33 = vrot.slane %v681_v2, 1  ;;  %876 = vmatpush.bf16.msrb.mxu3 %v1098_v38 }
 0x426   :  { %632 = vst.msk [vmem:[%s1761_s9 + $0x30] sm:$0xff] %vm255_vm1, %v602_v17  ;;  %v684_v5 = vsel %vm255_vm1, %v602_v17, 0.0 }
 0x427   :  { %v840_v11 = vsel %vm839_vm6, %v821_v20, %v838_v57  ;;  %v683_v6 = vadd.f32 %v682_v33, %v681_v2  ;;  %v685_v53 = vrot.slane %v684_v5, 4  ;;  %615 = vmatmul.bf16.gmra.mxu2 %v551_v24 }
 0x429   :  { %v766_v18 = vmul.f32 %v1588_v29, %v683_v6  ;;  %v686_v46 = vadd.f32 %v685_v53, %v684_v5 }
 0x42b   :  { %v782_v8 = vpack.c.bf16 %v766_v18, %v766_v18  ;;  %v687_v9 = vrot.slane %v686_v46, 2  ;;  %v603_v27 = vpop.f32.mrf.mxu2 }
 0x42c   :  { %v604_v47 = vadd.f32 %v603_v27, %v1375_v19  ;;  %v544_v19 = vmul.f32 %v1191_v15, %v1573_v60 }
 0x42d   :  { %v822_v13 = vunpack.c.l.b16 %v782_v8  ;;  %v688_v14 = vadd.f32 %v687_v9, %v686_v46  ;;  %v1097_v8 = vld [vmem:[#allocation5] sm:$0xff] }
 0x42e   :  { %633 = vst.msk [vmem:[%s1761_s9 + $0x38] sm:$0xff] %vm255_vm1, %v604_v47  ;;  %v691_v16 = vsel %vm255_vm1, %v604_v47, 0.0  ;;  %v552_v42 = vpack.c.bf16 %v544_v19, %v543_v37  ;;  %877 = vmatpush.bf16.msrb.mxu3 %v1097_v8 }
 0x42f   :  { %v689_v22 = vrot.slane %v688_v14, 1  ;;  %v692_v0 = vrot.slane %v691_v16, 4  ;;  %v842_v35 = vsel %vm841_vm7, %v822_v13, %v840_v11 }
 0x431   :  { %v690_v4 = vadd.f32 %v689_v22, %v688_v14  ;;  %v693_v1 = vadd.f32 %v692_v0, %v691_v16 }
 0x433   :  { %v767_v54 = vmul.f32 %v1588_v29, %v690_v4  ;;  %v694_v23 = vrot.slane %v693_v1, 2 }
 0x435   :  { %v783_v10 = vpack.c.bf16 %v767_v54, %v767_v54  ;;  %v695_v61 = vadd.f32 %v694_v23, %v693_v1  ;;  %v1105_v54 = vld [vmem:[%s1758_s6 + $0x30] sm:$0xff] }
 0x437   :  { %v823_v43 = vunpack.c.l.b16 %v783_v10  ;;  %v696_v12 = vrot.slane %v695_v61, 1  ;;  %620 = vmatmul.bf16.gmra.mxu2 %v552_v42 }
 0x439   :  { %v697_v50 = vadd.f32 %v696_v12, %v695_v61  ;;  %v844_v3 = vsel %vm843_vm8, %v823_v43, %v842_v35  ;;  %v1106_v35 = vld [vmem:[%s1758_s6 + $0x38] sm:$0xff] }
 0x43a   :  { %955 = vmatpush.bf16.msra.mxu3 %v1106_v35 }
 0x43b   :  { %v768_v28 = vmul.f32 %v1588_v29, %v697_v50  ;;  %v1104_v50 = vld [vmem:[%s1758_s6 + $0x28] sm:$0xff] }
 0x43d   :  { %v784_v51 = vpack.c.bf16 %v768_v28, %v768_v28 }
 0x43e   :  { %956 = vmatpush.bf16.msra.mxu3 %v1105_v54 }
 0x43f   :  { %v824_v60 = vunpack.c.l.b16 %v784_v51 }
 0x441   :  { %v1649_v26 = vsel %vm845_vm9, %v824_v60, %v844_v3 }
 0x442   :  { %957 = vmatpush.bf16.msra.mxu3 %v1104_v50 }
 0x48a   :  { %v606_v55 = vpop.f32.mrf.mxu2 }
 0x48b   :  { %v607_v56 = vadd.f32 %v606_v55, %v1410_v36 }
 0x48d   :  { %634 = vst.msk [vmem:[%s1761_s9 + $0x40] sm:$0xff] %vm255_vm1, %v607_v56  ;;  %v698_v63 = vsel %vm255_vm1, %v607_v56, 0.0 }
 0x48e   :  { %v699_v17 = vrot.slane %v698_v63, 4 }
 0x490   :  { %v700_v30 = vadd.f32 %v699_v17, %v698_v63 }
 0x492   :  { %v608_v7 = vpop.f32.mrf.mxu2  ;;  %v701_v27 = vrot.slane %v700_v30, 2 }
 0x493   :  { %v609_v57 = vadd.f32 %v608_v7, %v1408_v34 }
 0x494   :  { %v702_v25 = vadd.f32 %v701_v27, %v700_v30 }
 0x495   :  { %635 = vst.msk [vmem:[%s1761_s9 + $0x48] sm:$0xff] %vm255_vm1, %v609_v57  ;;  %v705_v21 = vsel %vm255_vm1, %v609_v57, 0.0 }
 0x496   :  { %v703_v61 = vrot.slane %v702_v25, 1 }
 0x498   :  { %v704_v7 = vadd.f32 %v703_v61, %v702_v25 }
 0x49a   :  { %v611_v58 = vpop.f32.mrf.mxu2  ;;  %v769_v63 = vmul.f32 %v1588_v29, %v704_v7 }
 0x49b   :  { %v612_v59 = vadd.f32 %v611_v58, %v1401_v31 }
 0x49d   :  { %636 = vst.msk [vmem:[%s1761_s9 + $0x50] sm:$0xff] %vm255_vm1, %v612_v59  ;;  %v712_v31 = vsel %vm255_vm1, %v612_v59, 0.0 }
 0x49e   :  { %v713_v48 = vrot.slane %v712_v31, 4 }
 0x4a0   :  { %v714_v24 = vadd.f32 %v713_v48, %v712_v31 }
 0x4a2   :  { %v613_v36 = vpop.f32.mrf.mxu2  ;;  %v715_v9 = vrot.slane %v714_v24, 2 }
 0x4a3   :  { %v614_v49 = vadd.f32 %v613_v36, %v1403_v32  ;;  %v706_v32 = vrot.slane %v705_v21, 4 }
 0x4a4   :  { %v716_v22 = vadd.f32 %v715_v9, %v714_v24 }
 0x4a5   :  { %637 = vst.msk [vmem:[%s1761_s9 + $0x58] sm:$0xff] %vm255_vm1, %v614_v49  ;;  %v719_v41 = vsel %vm255_vm1, %v614_v49, 0.0  ;;  %v707_v52 = vadd.f32 %v706_v32, %v705_v21  ;;  %v1103_v49 = vld [vmem:[%s1758_s6 + $0x20] sm:$0xff] }
 0x4a6   :  { %v720_v20 = vrot.slane %v719_v41, 4  ;;  %v717_v10 = vrot.slane %v716_v22, 1  ;;  %958 = vmatpush.bf16.msra.mxu3 %v1103_v49 }
 0x4a7   :  { %v708_v18 = vrot.slane %v707_v52, 2 }
 0x4a8   :  { %v721_v11 = vadd.f32 %v720_v20, %v719_v41  ;;  %v718_v55 = vadd.f32 %v717_v10, %v716_v22  ;;  %v1126_v10 = vld [vmem:[%s1757_s5] ss:$0 sm:$0xff]  ;;  %s977_s5 = sshll.u32 %s1760_s8, 4  ;;  %s978_s5 = int_to_ptr.hbm [resolvable:$true] %s977_s5 }
 0x4aa   :  { %v616_v34 = vpop.f32.mrf.mxu2  ;;  %v722_v47 = vrot.slane %v721_v11, 2  ;;  %v771_v31 = vmul.f32 %v1588_v29, %v718_v55 }
 0x4ab   :  { %v617_v62 = vadd.f32 %v616_v34, %v1415_v39 }
 0x4ac   :  { %v723_v4 = vadd.f32 %v722_v47, %v721_v11 }
 0x4ad   :  { %638 = vst.msk [vmem:[%s1761_s9 + $0x60] sm:$0xff] %vm255_vm1, %v617_v62  ;;  %v726_v2 = vsel %vm255_vm1, %v617_v62, 0.0 }
 0x4ae   :  { %v727_v39 = vrot.slane %v726_v2, 4  ;;  %v724_v42 = vrot.slane %v723_v4, 1 }
 0x4b0   :  { %v728_v6 = vadd.f32 %v727_v39, %v726_v2  ;;  %v725_v57 = vadd.f32 %v724_v42, %v723_v4  ;;  %v787_v39 = vpack.c.bf16 %v771_v31, %v771_v31 }
 0x4b2   :  { %v618_v33 = vpop.f32.mrf.mxu2  ;;  %v729_v14 = vrot.slane %v728_v6, 2  ;;  %v772_v41 = vmul.f32 %v1588_v29, %v725_v57 }
 0x4b3   :  { %v619_v5 = vadd.f32 %v618_v33, %v1417_v40  ;;  %v709_v40 = vadd.f32 %v708_v18, %v707_v52  ;;  %v785_v33 = vpack.c.bf16 %v769_v63, %v769_v63  ;;  %v827_v18 = vunpack.c.l.b16 %v787_v39 }
 0x4b4   :  { %v730_v1 = vadd.f32 %v729_v14, %v728_v6  ;;  %v788_v24 = vpack.c.bf16 %v772_v41, %v772_v41 }
 0x4b5   :  { %639 = vst.msk [vmem:[%s1761_s9 + $0x68] sm:$0xff] %vm255_vm1, %v619_v5  ;;  %v733_v53 = vsel %vm255_vm1, %v619_v5, 0.0  ;;  %v825_v8 = vunpack.c.l.b16 %v785_v33 }
 0x4b6   :  { %v734_v46 = vrot.slane %v733_v53, 4  ;;  %v731_v12 = vrot.slane %v730_v1, 1  ;;  %v828_v9 = vunpack.c.l.b16 %v788_v24 }
 0x4b8   :  { %v735_v13 = vadd.f32 %v734_v46, %v733_v53  ;;  %v732_v59 = vadd.f32 %v731_v12, %v730_v1 }
 0x4ba   :  { %v736_v15 = vrot.slane %v735_v13, 2  ;;  %v621_v16 = vpop.f32.mrf.mxu2  ;;  %v773_v38 = vmul.f32 %v1588_v29, %v732_v59 }
 0x4bb   :  { %v622_v0 = vadd.f32 %v621_v16, %v1427_v44  ;;  %v710_v44 = vrot.slane %v709_v40, 1 }
 0x4bc   :  { %v737_v23 = vadd.f32 %v736_v15, %v735_v13  ;;  %v789_v30 = vpack.c.bf16 %v773_v38, %v773_v38 }
 0x4bd   :  { %640 = vst.msk [vmem:[%s1761_s9 + $0x70] sm:$0xff] %vm255_vm1, %v622_v0  ;;  %v740_v19 = vsel %vm255_vm1, %v622_v0, 0.0  ;;  %v711_v3 = vadd.f32 %v710_v44, %v709_v40  ;;  %v1101_v44 = vld [vmem:[%s1758_s6 + $0x10] sm:$0xff] }
 0x4be   :  { %v741_v37 = vrot.slane %v740_v19, 4  ;;  %v738_v28 = vrot.slane %v737_v23, 1  ;;  %v829_v47 = vunpack.c.l.b16 %v789_v30 }
 0x4bf   :  { %v770_v34 = vmul.f32 %v1588_v29, %v711_v3 }
 0x4c0   :  { %v742_v43 = vadd.f32 %v741_v37, %v740_v19  ;;  %v739_v21 = vadd.f32 %v738_v28, %v737_v23  ;;  %v1100_v23 = vld [vmem:[%s1758_s6 + $0x8] sm:$0xff]  ;;  %v1127_v28 = vld [vmem:[%s1759_s7] ss:$0 sm:$0xff] }
 0x4c1   :  { %v786_v48 = vpack.c.bf16 %v770_v34, %v770_v34 }
 0x4c2   :  { %v743_v51 = vrot.slane %v742_v43, 2  ;;  %v623_v60 = vpop.f32.mrf.mxu2  ;;  %v774_v17 = vmul.f32 %v1588_v29, %v739_v21 }
 0x4c3   :  { %v624_v56 = vadd.f32 %v623_v60, %v1429_v45  ;;  %v826_v11 = vunpack.c.l.b16 %v786_v48 }
 0x4c4   :  { %v744_v58 = vadd.f32 %v743_v51, %v742_v43  ;;  %v790_v6 = vpack.c.bf16 %v774_v17, %v774_v17 }
 0x4c5   :  { %641 = vst.msk [vmem:[%s1761_s9 + $0x78] sm:$0xff] %vm255_vm1, %v624_v56  ;;  %v747_v36 = vsel %vm255_vm1, %v624_v56, 0.0  ;;  %v847_v13 = vsel %vm833_vm3, %v826_v11, %v825_v8 }
 0x4c6   :  { %v745_v45 = vrot.slane %v744_v58, 1  ;;  %v748_v62 = vrot.slane %v747_v36, 4  ;;  %v830_v14 = vunpack.c.l.b16 %v790_v6  ;;  %v848_v15 = vsel %vm835_vm4, %v827_v18, %v847_v13 }
 0x4c7   :  { %v849_v22 = vsel %vm837_vm5, %v828_v9, %v848_v15 }
 0x4c8   :  { %v746_v32 = vadd.f32 %v745_v45, %v744_v58  ;;  %v749_v2 = vadd.f32 %v748_v62, %v747_v36  ;;  %v850_v35 = vsel %vm839_vm6, %v829_v47, %v849_v22 }
 0x4c9   :  { %v851_v4 = vsel %vm841_vm7, %v830_v14, %v850_v35 }
 0x4ca   :  { %v750_v20 = vrot.slane %v749_v2, 2  ;;  %v775_v52 = vmul.f32 %v1588_v29, %v746_v32 }
 0x4cc   :  { %v751_v5 = vadd.f32 %v750_v20, %v749_v2  ;;  %v791_v46 = vpack.c.bf16 %v775_v52, %v775_v52 }
 0x4ce   :  { %v752_v53 = vrot.slane %v751_v5, 1  ;;  %v831_v16 = vunpack.c.l.b16 %v791_v46 }
 0x4d0   :  { %v753_v27 = vadd.f32 %v752_v53, %v751_v5  ;;  %v852_v1 = vsel %vm843_vm8, %v831_v16, %v851_v4 }
 0x4d2   :  { %v776_v40 = vmul.f32 %v1588_v29, %v753_v27  ;;  %v1102_v29 = vld [vmem:[%s1758_s6 + $0x18] sm:$0xff] }
 0x4d3   :  { %959 = vmatpush.bf16.msra.mxu3 %v1102_v29 }
 0x4d4   :  { %v792_v0 = vpack.c.bf16 %v776_v40, %v776_v40 }
 0x4d6   :  { %v832_v25 = vunpack.c.l.b16 %v792_v0 }
 0x4d7   :  { %960 = vmatpush.bf16.msra.mxu3 %v1101_v44 }
 0x4d8   :  { %v853_v19 = vsel %vm845_vm9, %v832_v25, %v852_v1 }
 0x4d9   :  { %v854_v54 = vpack.c.b16 %v853_v19, %v1649_v26  ;;  %v1099_v26 = vld [vmem:[%s1758_s6] sm:$0xff]  ;;  %s1281_s6 = smov [#allocation7]  }
 0x4da   :  { %s975_s22 = sshll.u32 %s1281_s6, 4  ;;  %s976_s22 = int_to_ptr.vmem [resolvable:$true] %s975_s22 }
 0x4db   :  { %1055 = vmatmul.msk.bf16.vlgmr.msrb.gmra.mxu3 %vm255_vm1, %v854_v54 }
 0x4dc   :  { %961 = vmatpush.bf16.msra.mxu3 %v1100_v23 }
 0x4e0   :  { %962 = vmatpush.bf16.msra.mxu3 %v1099_v26 }
 0x55e   :  { %v879_v37 = vpop.f32.mrf.mxu3 }
 0x55f   :  { %v880_v61 = vadd.f32 %v1126_v10, %v879_v37 }
 0x561   :  { %v884_v12 = vmax.f32 %v880_v61, 0.0 }
 0x566   :  { %v881_v42 = vpop.f32.mrf.mxu3 }
 0x567   :  { %v882_v43 = vadd.f32 %v1126_v10, %v881_v42 }
 0x569   :  { %v885_v50 = vmax.f32 %v882_v43, 0.0 }
 0x56b   :  { %v886_v3 = vpack.c.bf16 %v885_v50, %v884_v12 }
 0x56d   :  { %963 = vmatmul.bf16.vlgmr.msra.gmra.mxu3 %v886_v3 }
 0x5f0   :  { %v964_v51 = vpop.f32.mrf.mxu3 }
 0x5f1   :  { %v965_v60 = vadd.f32 %v1127_v28, %v964_v51 }
 0x5f3   :  { %969 = vst [vmem:[#allocation7] sm:$0xff] %v965_v60 }
 0x5f8   :  { %v966_v55 = vpop.f32.mrf.mxu3 }
 0x5f9   :  { %v967_v56 = vadd.f32 %v1127_v28, %v966_v55 }
 0x5fb   :  { %970 = vst [vmem:[#allocation7 + $0x8] sm:$0xff] %v967_v56 }
 0x5fc   :  { %983 = dma.vmem_to_hbm [thread:$0]  %s976_s22, 256, %s978_s5, [#allocation4], %s1273_s17, %s1273_s17, %s1274_s18  }
 0x5fd   :  { %1270 = dma.done.wait [#allocation4], 256  }
 0x5fe   :  { %1271 = vsyncadd [#allocation4], 4294967040 }
 0x5ff   :  { %992 = vsyncpa [#allocation3], 1 }
 0x600   :  { %993 = vsyncpa [#allocation6], 1 }
 0x601   :  { %994 = vsyncpa [#allocation4], 1 }

</bundles_post_ra>
